<compile_context>
chip_gen: v5e
topology: v5e:2x2
jax: 0.10.0
libtpu: 0.0.40
codegen_flags: <defaults>
</compile_context>

<pallas_src>
import functools

import jax
import jax.numpy as jnp
from jax import lax
from jax.experimental import pallas as pl
from jax.experimental.pallas import tpu as pltpu


def _round_up(x, m):
    return ((x + m - 1) // m) * m


def _pick_tile(size, want, align):
    """Largest tile <= want (multiple of `align`).  Prefers a tile (>= half of
    the candidate) that divides `size` exactly so the wrapper never pads."""
    hi = max(align, min(_round_up(want, align), _round_up(size, align)))
    lo = max(align, hi // 2)
    t = hi
    while t >= lo:
        if size % t == 0:
            return t
        t -= align
    return hi


def _barlow_kernel(y1_ref, y2_ref, out_ref, acc_ref, *, n_total, d_total,
                   tile_d, lamb):
    """Grid = (D_i tiles, D_j tiles, batch-reduction steps)."""
    i = pl.program_id(0)          # row tile of c
    j = pl.program_id(1)          # col tile of c
    k = pl.program_id(2)          # batch reduction step (innermost)

    @pl.when(k == 0)
    def _():
        acc_ref[...] = jnp.zeros_like(acc_ref)

    # (tile_n, td)^T @ (tile_n, td): contract over the batch dim directly so
    # the transpose folds into the MXU push (no wrapper-side transposed copy).
    acc_ref[...] += lax.dot_general(
        y1_ref[...], y2_ref[...],
        dimension_numbers=(((0,), (0,)), ((), ())),
        preferred_element_type=jnp.float32,
    )

    @pl.when(k == pl.num_programs(2) - 1)
    def _():
        acc = acc_ref[...]
        inv_n = jnp.float32(1.0 / n_total)
        lam = jnp.float32(lamb)

        # Off-diagonal-style term for the whole tile (diagonal fixed up below):
        #   lamb * sum((acc / N)^2) == lamb / N^2 * sum(acc^2)
        # Padded feature rows/cols have acc == 0, so they add nothing.
        part_off = lam * (inv_n * inv_n) * jnp.sum(acc * acc)

        @pl.when(i != j)
        def _():
            out_ref[...] = jnp.full(out_ref.shape, part_off, jnp.float32)

        @pl.when(i == j)
        def _():
            # Diagonal correction, only on the gi diagonal tiles:
            #   sum_diag[(c - 1)^2 - lamb * c^2],  c = acc / N, rows < d_total
            r = lax.broadcasted_iota(jnp.int32, (tile_d, tile_d), 0)
            cidx = lax.broadcasted_iota(jnp.int32, (tile_d, tile_d), 1)
            on_diag = (r == cidx) & ((i * tile_d + r) < d_total)
            c = acc * inv_n
            corr = jnp.sum(
                jnp.where(on_diag, (c - 1.0) ** 2 - lam * c * c, 0.0))
            out_ref[...] = jnp.full(out_ref.shape, part_off + corr,
                                    jnp.float32)


def barlow_twins_loss(y1, y2, *, lamb=0.02, tile_n=512, tile_d=1024,
                      compute_dtype=jnp.bfloat16):
    """Pallas implementation of BarlowTwins.forward(y1, y2).

    tile_n: batch-reduction tile (MXU contraction depth per step).
    tile_d: feature tile for both axes of the (D, D) accumulator.
    compute_dtype: input compute dtype (default bfloat16; the accumulator and
      epilogue stay float32).  Pass None / jnp.float32 for full-precision.
    """
    assert y1.shape == y2.shape and y1.ndim == 2
    n, d = y1.shape

    if compute_dtype is None:
        compute_dtype = y1.dtype
    compute_dtype = jnp.dtype(compute_dtype)
    itemsize = compute_dtype.itemsize
    sublane = 8 * max(1, 4 // itemsize)      # 8 for f32, 16 for bf16

    tile_n = _pick_tile(n, tile_n, sublane)  # sublane-aligned (packed dtypes)
    tile_d = _pick_tile(d, tile_d, 128)      # lane-aligned
    n_pad = _round_up(n, tile_n)
    d_pad = _round_up(d, tile_d)

    def prep(y):
        y = y.astype(compute_dtype)
        if (n_pad, d_pad) != (n, d):
            # Only taken when no dividing tile exists.  Zero-padded batch rows
            # contribute nothing; padded feature cols stay zero in c and are
            # excluded from the diagonal term by the d_total mask.
            y = jnp.pad(y, ((0, n_pad - n), (0, d_pad - d)))
        return y

    y1p, y2p = prep(y1), prep(y2)

    gi = d_pad // tile_d
    gj = d_pad // tile_d
    gk = n_pad // tile_n

    kernel = functools.partial(
        _barlow_kernel, n_total=n, d_total=d, tile_d=tile_d, lamb=lamb)

    # VMEM budget: f32 acc tile + double-buffered y1/y2 input blocks + output.
    acc_bytes = tile_d * tile_d * 4
    in_bytes = 2 * 2 * tile_n * tile_d * itemsize
    out_bytes = 2 * 8 * 128 * 4
    # Cap at 48 MiB: leaves headroom on v7x (64 MiB per-TC VMEM); plenty on
    # v5e/v6e (128 MiB) for the default tiles.
    vmem_limit = int(min(max(1.2 * (acc_bytes + in_bytes + out_bytes)
                             + (2 << 20), 16 << 20), 48 << 20))

    partials = pl.pallas_call(
        kernel,
        out_shape=jax.ShapeDtypeStruct((gi * 8, gj * 128), jnp.float32),
        grid_spec=pltpu.PrefetchScalarGridSpec(
            num_scalar_prefetch=0,
            grid=(gi, gj, gk),
            in_specs=[
                pl.BlockSpec((tile_n, tile_d), lambda i, j, k: (k, i)),
                pl.BlockSpec((tile_n, tile_d), lambda i, j, k: (k, j)),
            ],
            out_specs=pl.BlockSpec((8, 128), lambda i, j, k: (i, j)),
            scratch_shapes=[pltpu.VMEM((tile_d, tile_d), jnp.float32)],
        ),
        compiler_params=pltpu.CompilerParams(
            # i / j tiles are independent (megacore-shardable on v7x); the
            # batch axis is the resident-accumulator reduction.
            dimension_semantics=("parallel", "parallel", "arbitrary"),
            vmem_limit_bytes=vmem_limit,
        ),
    )(y1p, y2p)

    # Each (i, j) tile broadcast its scalar partial across its (8, 128) block;
    # take one representative per block and sum.
    return jnp.sum(partials[::8, ::128])


def _reference_loss(y1, y2, lamb=0.02):
    """Pure-JAX reference mirroring the PyTorch module."""
    c = jnp.dot(y1.T, y2, precision=lax.Precision.HIGHEST) / y1.shape[0]
    diag = jnp.diagonal(c)
    on_diag = jnp.sum((diag - 1.0) ** 2)
    off_diag = jnp.sum(c ** 2) - jnp.sum(diag ** 2)
    return on_diag + lamb * off_diag


if __name__ == "__main__":
    key = jax.random.PRNGKey(0)
    k1, k2 = jax.random.split(key)
    # Small, deliberately non-tile-aligned shapes: batch=96, feature dim=320.
    # Exercises feature padding, a 3x3 (i, j) tile grid (diag + off-diag
    # tiles), a 2-step batch reduction, and the diagonal d_total mask.
    N, D = 96, 320
    y1 = jax.random.normal(k1, (N, D), dtype=jnp.float32)
    y2 = jax.random.normal(k2, (N, D), dtype=jnp.float32)

    # Default bf16 compute path: compare against the reference evaluated on
    # bf16-rounded inputs (kernel accumulation is f32).
    loss_bf16 = barlow_twins_loss(y1, y2, lamb=0.02, tile_n=64, tile_d=128)
    loss_bf16 = jax.block_until_ready(loss_bf16)
    ref_bf16 = _reference_loss(y1.astype(jnp.bfloat16).astype(jnp.float32),
                               y2.astype(jnp.bfloat16).astype(jnp.float32),
                               lamb=0.02)
    assert jnp.allclose(loss_bf16, ref_bf16, rtol=1e-3, atol=1e-2), (
        loss_bf16, ref_bf16)

    # Full f32 compute path, tighter check against the f32 reference.
    loss_f32 = barlow_twins_loss(y1, y2, lamb=0.02, tile_n=64, tile_d=128,
                                 compute_dtype=jnp.float32)
    loss_f32 = jax.block_until_ready(loss_f32)
    ref_f32 = _reference_loss(y1, y2, lamb=0.02)
    assert jnp.allclose(loss_f32, ref_f32, rtol=1e-3, atol=1e-2), (
        loss_f32, ref_f32)

    print("KERNEL_OK")
</pallas_src>

<mosaic_0001>
module attributes {stable_mosaic.version = 11 : i64} {
  func.func @_barlow_kernel(%arg0: i32, %arg1: i32, %arg2: i32, %arg3: memref<48x128xbf16, #tpu.memory_space<vmem>>, %arg4: memref<48x128xbf16, #tpu.memory_space<vmem>>, %arg5: memref<8x128xf32, #tpu.memory_space<vmem>>, %arg6: memref<128x128xf32, #tpu.memory_space<vmem>>) attributes {dimension_semantics = [#tpu.dimension_semantics<parallel>, #tpu.dimension_semantics<parallel>, #tpu.dimension_semantics<arbitrary>], iteration_bounds = array<i64: 3, 3, 2>, scalar_prefetch = 0 : i64, scratch_operands = 1 : i64, tpu.core_type = #tpu.core_type<tc>, window_params = [{transform_indices = @transform_0, window_bounds = array<i64: 48, 128>}, {transform_indices = @transform_1, window_bounds = array<i64: 48, 128>}, {transform_indices = @transform_2, window_bounds = array<i64: 8, 128>}]} {
    %c0_i32 = arith.constant 0 : i32
    %0 = arith.cmpi eq, %arg2, %c0_i32 : i32
    %1 = arith.extui %0 : i1 to i32
    %c0_i32_0 = arith.constant 0 : i32
    %2 = arith.cmpi ne, %1, %c0_i32_0 : i32
    scf.if %2 {
      %cst_9 = arith.constant 0.000000e+00 : f32
      %12 = vector.broadcast %cst_9 : f32 to vector<128x128xf32>
      %c0_10 = arith.constant 0 : index
      %c0_11 = arith.constant 0 : index
      %13 = vector.load %arg6[%c0_10, %c0_11] : memref<128x128xf32, #tpu.memory_space<vmem>>, vector<128x128xf32>
      tpu.vector_store %arg6[%c0_10, %c0_11], %12 {strides = array<i32>} : memref<128x128xf32, #tpu.memory_space<vmem>>, vector<128x128xf32>,
    } else {
    }
    %c0 = arith.constant 0 : index
    %c0_1 = arith.constant 0 : index
    %3 = vector.load %arg6[%c0, %c0_1] : memref<128x128xf32, #tpu.memory_space<vmem>>, vector<128x128xf32>
    %c0_2 = arith.constant 0 : index
    %c0_3 = arith.constant 0 : index
    %4 = vector.load %arg3[%c0_2, %c0_3] : memref<48x128xbf16, #tpu.memory_space<vmem>>, vector<48x128xbf16>
    %c0_4 = arith.constant 0 : index
    %c0_5 = arith.constant 0 : index
    %5 = vector.load %arg4[%c0_4, %c0_5] : memref<48x128xbf16, #tpu.memory_space<vmem>>, vector<48x128xbf16>
    %cst = arith.constant dense<0.000000e+00> : vector<128x128xf32>
    %6 = tpu.matmul %4, %5, %cst {dimension_numbers = #tpu.dot_dimension_numbers<[0], [0], [1], [1], [0, 1, 1, 1], [], []>} : vector<48x128xbf16>, vector<48x128xbf16>, vector<128x128xf32> -> vector<128x128xf32>
    %7 = arith.addf %3, %6 : vector<128x128xf32>
    %c0_6 = arith.constant 0 : index
    %c0_7 = arith.constant 0 : index
    %8 = vector.load %arg6[%c0_6, %c0_7] : memref<128x128xf32, #tpu.memory_space<vmem>>, vector<128x128xf32>
    tpu.vector_store %arg6[%c0_6, %c0_7], %7 {strides = array<i32>} : memref<128x128xf32, #tpu.memory_space<vmem>>, vector<128x128xf32>,
    %c1_i32 = arith.constant 1 : i32
    %9 = arith.cmpi eq, %arg2, %c1_i32 : i32
    %10 = arith.extui %9 : i1 to i32
    %c0_i32_8 = arith.constant 0 : i32
    %11 = arith.cmpi ne, %10, %c0_i32_8 : i32
    scf.if %11 {
      %c0_9 = arith.constant 0 : index
      %c0_10 = arith.constant 0 : index
      %12 = vector.load %arg6[%c0_9, %c0_10] : memref<128x128xf32, #tpu.memory_space<vmem>>, vector<128x128xf32>
      %cst_11 = arith.constant 0.010416667 : f32
      %cst_12 = arith.constant 0.010416667 : f32
      %13 = arith.mulf %cst_11, %cst_12 : f32
      %cst_13 = arith.constant 2.000000e-02 : f32
      %14 = arith.mulf %cst_13, %13 : f32
      %15 = arith.mulf %12, %12 : vector<128x128xf32>
      %16 = vector.shape_cast %15 : vector<128x128xf32> to vector<1x128x128xf32>
      %cst_14 = arith.constant dense<0.000000e+00> : vector<1xf32>
      %17 = vector.multi_reduction <add>, %16, %cst_14 [1, 2] : vector<1x128x128xf32> to vector<1xf32>
      %18 = vector.shape_cast %17 : vector<1xf32> to vector<1x1x1xf32>
      %19 = vector.extract %18[0, 0, 0] : f32 from vector<1x1x1xf32>
      %20 = arith.mulf %14, %19 : f32
      %21 = arith.cmpi ne, %arg0, %arg1 : i32
      %22 = arith.extui %21 : i1 to i32
      %c0_i32_15 = arith.constant 0 : i32
      %23 = arith.cmpi ne, %22, %c0_i32_15 : i32
      scf.if %23 {
        %27 = vector.broadcast %20 : f32 to vector<8x128xf32>
        %c0_19 = arith.constant 0 : index
        %c0_20 = arith.constant 0 : index
        %28 = vector.load %arg5[%c0_19, %c0_20] : memref<8x128xf32, #tpu.memory_space<vmem>>, vector<8x128xf32>
        tpu.vector_store %arg5[%c0_19, %c0_20], %27 {strides = array<i32>} : memref<8x128xf32, #tpu.memory_space<vmem>>, vector<8x128xf32>,
      } else {
      }
      %24 = arith.cmpi eq, %arg0, %arg1 : i32
      %25 = arith.extui %24 : i1 to i32
      %cst_16 = arith.constant 0.010416667 : f32
      %cst_17 = arith.constant 2.000000e-02 : f32
      %c0_i32_18 = arith.constant 0 : i32
      %26 = arith.cmpi ne, %25, %c0_i32_18 : i32
      scf.if %26 {
        %27 = tpu.iota {dimensions = array<i32: 0>} : vector<128x128xi32>
        %28 = tpu.iota {dimensions = array<i32: 1>} : vector<128x128xi32>
        %29 = arith.cmpi eq, %27, %28 : vector<128x128xi32>
        %c128_i32 = arith.constant 128 : i32
        %30 = arith.muli %arg0, %c128_i32 : i32
        %31 = vector.broadcast %30 : i32 to vector<128x128xi32>
        %32 = arith.addi %31, %27 : vector<128x128xi32>
        %c320_i32 = arith.constant 320 : i32
        %33 = vector.broadcast %c320_i32 : i32 to vector<128x128xi32>
        %34 = arith.cmpi slt, %32, %33 : vector<128x128xi32>
        %35 = arith.andi %29, %34 : vector<128x128xi1>
        %36 = vector.broadcast %cst_16 : f32 to vector<128x128xf32>
        %37 = arith.mulf %12, %36 : vector<128x128xf32>
        %cst_19 = arith.constant 1.000000e+00 : f32
        %38 = vector.broadcast %cst_19 : f32 to vector<128x128xf32>
        %39 = arith.subf %37, %38 : vector<128x128xf32>
        %40 = arith.mulf %39, %39 : vector<128x128xf32>
        %41 = vector.broadcast %cst_17 : f32 to vector<128x128xf32>
        %42 = arith.mulf %41, %37 : vector<128x128xf32>
        %43 = arith.mulf %42, %37 : vector<128x128xf32>
        %44 = arith.subf %40, %43 : vector<128x128xf32>
        %cst_20 = arith.constant 0.000000e+00 : f32
        %45 = vector.broadcast %cst_20 : f32 to vector<128x128xf32>
        %46 = arith.select %35, %44, %45 : vector<128x128xi1>, vector<128x128xf32>
        %47 = vector.shape_cast %46 : vector<128x128xf32> to vector<1x128x128xf32>
        %cst_21 = arith.constant dense<0.000000e+00> : vector<1xf32>
        %48 = vector.multi_reduction <add>, %47, %cst_21 [1, 2] : vector<1x128x128xf32> to vector<1xf32>
        %49 = vector.shape_cast %48 : vector<1xf32> to vector<1x1x1xf32>
        %50 = vector.extract %49[0, 0, 0] : f32 from vector<1x1x1xf32>
        %51 = arith.addf %20, %50 : f32
        %52 = vector.broadcast %51 : f32 to vector<8x128xf32>
        %c0_22 = arith.constant 0 : index
        %c0_23 = arith.constant 0 : index
        %53 = vector.load %arg5[%c0_22, %c0_23] : memref<8x128xf32, #tpu.memory_space<vmem>>, vector<8x128xf32>
        tpu.vector_store %arg5[%c0_22, %c0_23], %52 {strides = array<i32>} : memref<8x128xf32, #tpu.memory_space<vmem>>, vector<8x128xf32>,
      } else {
      }
    } else {
    }
    return
  }
  func.func @transform_0(%arg0: i32, %arg1: i32, %arg2: i32) -> (i32, i32) {
    %c0_i32 = arith.constant 0 : i32
    return %arg2, %arg0 : i32, i32
  }
  func.func @transform_1(%arg0: i32, %arg1: i32, %arg2: i32) -> (i32, i32) {
    %c0_i32 = arith.constant 0 : i32
    return %arg2, %arg1 : i32, i32
  }
  func.func @transform_2(%arg0: i32, %arg1: i32, %arg2: i32) -> (i32, i32) {
    %c0_i32 = arith.constant 0 : i32
    return %arg0, %arg1 : i32, i32
  }
}

</mosaic_0001>

<bundles_post_ra>
// kernel: tpu_custom_call.1
= control target key start
LH: loop header
LB: loop body
LE: loop exit
PB: predicated region body
PF: predicated region fallthrough
CT: control target
= control target key end

     0   :  { %s2080_s0 = inlined_call_operand.hbm [shape: bf16[96,384], index: 0, kind: input, shape index: {}]   ;;  %s2081_s1 = inlined_call_operand.hbm [shape: bf16[96,384], index: 1, kind: input, shape index: {}]   ;;  %s2082_s2 = inlined_call_operand.hbm [shape: f32[24,384], index: 2, kind: output, shape index: {}]  }
   0x1   :  { %2094 = sst [smem:[#allocation23_spill]] %s2080_s0 }
   0x2   :  { %2095 = sst [smem:[#allocation24_spill]] %s2082_s2 }
   0x3   :  { %7 = vsyncpa [#allocation4], 0 }
   0x4   :  { %9 = vsyncpa [#allocation4 + $0x1], 0 }
   0x5   :  { %10 = vsyncpa [#allocation7], 0 }
   0x6   :  { %12 = vsyncpa [#allocation7 + $0x1], 0 }
   0x7   :  { %13 = vsyncpa [#allocation5], 0 }
   0x8   :  { %15 = vsyncpa [#allocation5 + $0x1], 0  ;;  %s1365_s9 = smov 0   ;;  %s1367_s10 = smov 0  }
   0x9   :  { %s1369_s11 = smov 0   ;;  %s1371_s12 = smov 0  }
   0xa   :  { %s1373_s13 = smov 0   ;;  %s1375_s14 = smov 0  }
   0xb   :  { %s1377_s15 = smov 0   ;;  %s1379_s16 = smov 0  }
   0xc   :  { %s1381_s17 = smov 0   ;;  %s1383_s18 = smov 0  }
   0xd   :  { %s1385_s19 = smov 0   ;;  %s1387_s20 = smov 0  }
   0xe   :  { %s1389_s21 = smov 0   ;;  %s1391_s22 = smov 0  }
   0xf   :  { %s1393_s23 = smov 0   ;;  %s1395_s24 = smov 0  }
  0x10 LB: > { %2096 = sst [smem:[#allocation12_spill]] %s1304_s14  ;;  %s873_s25 = sadd.s32 4294967295, %s1344_s24   ;;  %s1344_s24 = sphi %s1395_s24, %s21_s24   ;;  %s1340_s23 = sphi %s1393_s23, %s2163_s23   ;;  %s1336_s22 = sphi %s1391_s22, %s2177_s22   ;;  %s1332_s21 = sphi %s1389_s21, %s2176_s21   ;;  %s1328_s20 = sphi %s1387_s20, %s2160_s20   ;;  %s1324_s19 = sphi %s1385_s19, %s2175_s19   ;;  %s1320_s18 = sphi %s1383_s18, %s2174_s18   ;;  %s1316_s17 = sphi %s1381_s17, %s2173_s17   ;;  %s1312_s16 = sphi %s1379_s16, %s2172_s16   ;;  %s1308_s15 = sphi %s1377_s15, %s2171_s15   ;;  %s1304_s14 = sphi %s1375_s14, %s2170_s14   ;;  %s1300_s13 = sphi %s1373_s13, %s2169_s13   ;;  %s1296_s12 = sphi %s1371_s12, %s2168_s12   ;;  %s1292_s11 = sphi %s1369_s11, %s2167_s11   ;;  %s1288_s10 = sphi %s1367_s10, %s2166_s10   ;;  %s1284_s9 = sphi %s1365_s9, %s2164_s9  }
  0x11   : > { %2097 = sst [smem:[#allocation13_spill]] %s1316_s17  ;;  %s33_s26 = sadd.s32 1, %s1332_s21 }
  0x12   : > { %2098 = sst [smem:[#allocation14_spill]] %s1320_s18  ;;  %p1445_p0 = scmp.ge.s32.totalorder %s33_s26, 2 }
  0x13   : > { %2099 = sst [smem:[#allocation15_spill]] %s1324_s19  ;;  %p56_p1 = scmp.ne.s32.totalorder %s1316_s17, %s1312_s16 }
  0x14   : > { %2100 = sst [smem:[#allocation16_spill]] %s1328_s20  ;;  %s2179_s26 = smov (%p1445_p0, %s33_s26), 0 }
  0x15   : > { %2101 = sst [smem:[#allocation17_spill]] %s1340_s23  ;;  %p57_p2 = scmp.eq.s32.totalorder %s1344_s24, 0 }
  0x16   : > { %2103 = sst [smem:[#allocation18_spill]] %s2179_s26  ;;  %p62_p3 = scmp.ne.s32.totalorder %s1312_s16, %s1308_s15 }
  0x17   : > { %p1459_p4 = scmp.eq.s32.totalorder %s873_s25, 0  ;;  %p1463_p5 = scmp.eq.s32.totalorder %s873_s25, 17 }
  0x18   : > { %p58_p6 = por %p57_p2, %p56_p1  ;;  %p981_p8 = scmp.lt.s32.totalorder %s1344_s24, 18 }
  0x19   : > { %p1471_p7 = por %p1459_p4, %p62_p3  ;;  %s142_s5 = sand.u32 1, %s1316_s17  }
  0x1a   : > { %s953_s6 = smul.u32 24, %s142_s5  ;;  %p971_p9 = pnand %p981_p8, %p58_p6 }
  0x1b   : > { %s2084_s7 = smul.u32 18, %s1332_s21  ;;  %s2107_s0 = sld [smem:[#allocation23_spill]] }
  0x1c   : > { %s146_s15 = scalar_lea.vmem [#allocation3], %s953_s6  ;;  %s143_s6 = scalar_lea.sflag [#allocation4], %s142_s5 }
  0x1d   : > { %s151_s8 = sadd.s32 %s1340_s23, %s2084_s7  ;;  %s156_s25 = sshll.u32 %s146_s15, 4  ;;  %s157_s25 = int_to_ptr.vmem [resolvable:$true] %s156_s25 }
  0x1e   : > { %s877_s29 = sshll.u32 %s151_s8, 2  ;;  %s2085_s15 = smov 192  }
  0x1f   : > { %s2086_s7 = smov 64   ;;  %s2087_s8 = smov 4  }
  0x20   : > { %p879_p10 = scmp.ge.s32.totalorder %s1344_s24, 1  ;;  %p188_p11 = scmp.lt.s32.totalorder %s1344_s24, 19 }
  0x21   : > { %s153_s20 = scalar_lea.hbm %s2107_s0, %s877_s29  ;;  %s36_s28 = sadd.s32 1, %s1336_s22 }
  0x22   : > { %s154_s19 = sshll.u32 %s153_s20, 4  ;;  %p1491_p12 = pnand %p879_p10, %p188_p11  ;;  %s155_s19 = int_to_ptr.hbm [resolvable:$true] %s154_s19 }
  0x23   : > { %973 = dma.hbm_to_vmem [thread:$0]  (!%p971_p9), %s155_s19, 384, %s157_s25, %s143_s6, %s2085_s15, %s2086_s7, %s2087_s8  }
  0x24   : > { %s874_s20 = sadd.s32 4294967294, %s1344_s24   ;;  %s44_s29 = ssub.s32 %s1332_s21, %s2179_s26 }
  0x25   : > { %s2181_s28 = smov (!%p1445_p0, %s36_s28), %s1336_s22  ;;  %s77_s5 = sadd.s32 1, %s1304_s14 }
  0x26   : > { %p84_p13 = scmp.ne.s32.totalorder %s1304_s14, %s1300_s13  ;;  %p38_p1 = scmp.ge.s32.totalorder %s2181_s28, 3 }
  0x27   : > { %p90_p3 = scmp.ne.s32.totalorder %s1300_s13, %s1296_s12  ;;  %s105_s25 = sadd.s32 1, %s1292_s11 }
  0x28   : > { %p1509_p6 = por %p84_p13, %p57_p2  ;;  %s2183_s28 = smov (%p38_p1, %s2181_s28), 0 }
  0x29   : > { %2110 = sst [smem:[#allocation19_spill]] %s2183_s28  ;;  %s2111_s6 = sadd.s32 1, %s1340_s23 }
  0x2a   : > { %s2185_s6 = smov (!%p38_p1, %s2111_s6), %s1340_s23  ;;  %s73_s27 = ssub.s32 %s1336_s22, %s2183_s28 }
  0x2b   : > { %p1523_p0 = por %p90_p3, %p1459_p4  ;;  %p42_p2 = scmp.ge.s32.totalorder %s2185_s6, 3 }
  0x2c   : > { %s74_s12 = sor.u32 %s73_s27, %s44_s29  ;;  %p115_p10 = scmp.ne.s32.totalorder %s1292_s11, %s1288_s10 }
  0x2d   : > { %p75_p9 = scmp.eq.s32.totalorder %s74_s12, 0  ;;  %s2187_s6 = smov (%p42_p2, %s2185_s6), 0 }
  0x2e   : > { %2113 = sst [smem:[#allocation20_spill]] %s2187_s6  ;;  %s45_s7 = ssub.s32 %s1340_s23, %s2187_s6 }
  0x2f   : > { %s1532_s30 = scalar_select %p75_p9, %s1304_s14, %s77_s5  }
  0x30   : > { %p1538_p4 = por %p1463_p5, %p115_p10  ;;  %s46_s0 = sor.u32 %s45_s7, %s44_s29 }
  0x31   : > { %2114 = sst [smem:[#allocation21_spill]] %s1532_s30  ;;  %s102_s28 = sor.u32 %s73_s27, %s45_s7 }
  0x32   : > { %p47_p11 = scmp.eq.s32.totalorder %s46_s0, 0  ;;  %p103_p13 = scmp.eq.s32.totalorder %s102_s28, 0 }
  0x33   : > { %p121_p1 = scmp.ne.s32.totalorder %s1288_s10, %s1284_s9  ;;  %p122_p3 = scmp.eq.s32.totalorder %s874_s20, 17 }
  0x34   : > { %s2116_s12 = sadd.s32 1, %s1316_s17  ;;  %s166_s3 = sand.u32 1, %s1304_s14  }
  0x35   : > { %s1547_s26 = scalar_select %p47_p11, %s1316_s17, %s2116_s12  }
  0x36   : > { %s1550_s18 = scalar_select %p103_p13, %s1292_s11, %s105_s25  }
  0x37   : > { %2117 = sst [smem:[#allocation22_spill]] %s1547_s26  ;;  %p1552_p2 = por %p122_p3, %p121_p1 }
  0x38   : > { %s955_s6 = smul.u32 24, %s166_s3  ;;  %p974_p5 = pnand %p981_p8, %p1509_p6 }
  0x39   : > { %s2119_s23 = smul.u32 18, %s1332_s21  ;;  %s167_s12 = scalar_lea.sflag [#allocation7], %s166_s3 }
  0x3a   : > { %s170_s29 = scalar_lea.vmem [#allocation6], %s955_s6  ;;  %s2120_s26 = smov 4  }
  0x3b   : > { %s175_s30 = sadd.s32 %s1336_s22, %s2119_s23  ;;  %s180_s27 = sshll.u32 %s170_s29, 4  ;;  %s181_s27 = int_to_ptr.vmem [resolvable:$true] %s180_s27 }
  0x3c   : > { %s878_s0 = sshll.u32 %s175_s30, 2  ;;  %s2121_s17 = smov 64  }
  0x3d   : > { %s177_s20 = scalar_lea.hbm %s2081_s1, %s878_s0  ;;  %s2122_s14 = smov 192  }
  0x3e   : > { %s178_s25 = sshll.u32 %s177_s20, 4  ;;  %192 = sbr.rel (%p1491_p12) target bundleno = 1026 (0x402), region = 28  ;;  %s179_s25 = int_to_ptr.hbm [resolvable:$true] %s178_s25 }
  0x3f   : > { %976 = dma.hbm_to_vmem [thread:$0]  (!%p974_p5), %s179_s25, 384, %s181_s27, %s167_s12, %s2122_s14, %s2121_s17, %s2120_s26  }
  0x40   : > { %s194_s23 = sand.u32 (!%p1491_p12), 1, %s1312_s16  }
  0x41   : > { %s957_s19 = smul.u32 (!%p1491_p12), 24, %s194_s23  ;;  %s195_s30 = scalar_lea.sflag (!%p1491_p12), [#allocation4], %s194_s23 }
  0x43   : > { %s1573_s7 = scalar_lea.vmem [#allocation3], %s957_s19 }
  0x44   : > { %1271 = dma.done.wait (%p1471_p7), %s195_s30, 384  }
  0x45   : > { %1273 = vsyncadd (%p1471_p7), %s195_s30, 4294966912  ;;  %s204_s6 = sand.u32 1, %s1300_s13  }
  0x46   : > { %s958_s3 = smul.u32 24, %s204_s6  ;;  %s205_s14 = scalar_lea.sflag [#allocation7], %s204_s6 }
  0x48   : > { %s1580_s17 = scalar_lea.vmem [#allocation6], %s958_s3 }
  0x49   : > { %1275 = dma.done.wait (%p1523_p0), %s205_s14, 384  }
  0x4a   : > { %1277 = vsyncadd (%p1523_p0), %s205_s14, 4294966912  ;;  %s232_s26 = sand.u32 1, %s1288_s10   ;;  %s2123_s4 = sld [smem:[#allocation14_spill]] }
  0x4b   : > { %s880_s2 = sshll.u32 %s232_s26, 3 }
  0x4c   : > { %s1589_s0 = scalar_lea.vmem [#allocation8], %s880_s2 }
  0x50   : > { %p881_p7 = scmp.ne.s32.totalorder %s2123_s4, 0 }
  0x52   : > { %241 = sbr.rel (%p881_p7) target bundleno = 104 (0x68), region = 40 }
  0x57   : > { %v1349_v0 = vmov 0.0  }
  0x58   : > { %242 = vst [vmem:[#allocation2 + $0x30] sm:$0xff] %v1349_v0 }
  0x59   : > { %243 = vst [vmem:[#allocation2] sm:$0xff] %v1349_v0 }
  0x5a   : > { %244 = vst [vmem:[#allocation2 + $0x58] sm:$0xff] %v1349_v0 }
  0x5b   : > { %245 = vst [vmem:[#allocation2 + $0x18] sm:$0xff] %v1349_v0 }
  0x5c   : > { %246 = vst [vmem:[#allocation2 + $0x50] sm:$0xff] %v1349_v0 }
  0x5d   : > { %247 = vst [vmem:[#allocation2 + $0x68] sm:$0xff] %v1349_v0 }
  0x5e   : > { %248 = vst [vmem:[#allocation2 + $0x8] sm:$0xff] %v1349_v0 }
  0x5f   : > { %249 = vst [vmem:[#allocation2 + $0x48] sm:$0xff] %v1349_v0 }
  0x60   : > { %250 = vst [vmem:[#allocation2 + $0x40] sm:$0xff] %v1349_v0 }
  0x61   : > { %251 = vst [vmem:[#allocation2 + $0x20] sm:$0xff] %v1349_v0 }
  0x62   : > { %252 = vst [vmem:[#allocation2 + $0x10] sm:$0xff] %v1349_v0 }
  0x63   : > { %253 = vst [vmem:[#allocation2 + $0x38] sm:$0xff] %v1349_v0 }
  0x64   : > { %254 = vst [vmem:[#allocation2 + $0x60] sm:$0xff] %v1349_v0 }
  0x65   : > { %255 = vst [vmem:[#allocation2 + $0x70] sm:$0xff] %v1349_v0 }
  0x66   : > { %256 = vst [vmem:[#allocation2 + $0x78] sm:$0xff] %v1349_v0 }
  0x67   : > { %257 = vst [vmem:[#allocation2 + $0x28] sm:$0xff] %v1349_v0 }
  0x68 PF: > { %v938_v1 = vld [vmem:[%s1573_s7] sm:$0xff]  ;;  %v942_v3 = vld [vmem:[%s1580_s17 + $0x8] sm:$0xff]  ;;  %v941_v4 = vld [vmem:[%s1580_s17] sm:$0xff]  ;;  %vm338_vm0 = vcmask 392192   ;;  %s2124_s15 = sld [smem:[#allocation14_spill]] }
  0x69   : > { %304 = vxpose.xlu0.c.b16.start [1/3] (short) %v938_v1, 128  ;;  %v943_v2 = vld [vmem:[%s1580_s17 + $0x10] sm:$0xff]  ;;  %v939_v5 = vld [vmem:[%s1573_s7 + $0x8] sm:$0xff]  ;;  %v940_v6 = vld [vmem:[%s1573_s7 + $0x10] sm:$0xff] }
  0x6a   : > { %368 = vmatpush.bf16.msra.mxu0 %v943_v2  ;;  %944 = vmatpush.bf16.msra.mxu1 %v943_v2  ;;  %v258_v15 = vld [vmem:[#allocation2 + $0x30] sm:$0xff]  ;;  %v259_v18 = vld [vmem:[#allocation2] sm:$0xff]  ;;  %v260_v21 = vld [vmem:[#allocation2 + $0x58] sm:$0xff] }
  0x6b   : > { %945 = vmatpush.bf16.msra.mxu2 %v943_v2  ;;  %946 = vmatpush.bf16.msra.mxu3 %v943_v2  ;;  %v261_v24 = vld [vmem:[#allocation2 + $0x18] sm:$0xff]  ;;  %v262_v27 = vld [vmem:[#allocation2 + $0x50] sm:$0xff]  ;;  %v263_v30 = vld [vmem:[#allocation2 + $0x68] sm:$0xff] }
  0x6c   : > { %v264_v33 = vld [vmem:[#allocation2 + $0x8] sm:$0xff]  ;;  %v266_v39 = vld [vmem:[#allocation2 + $0x40] sm:$0xff]  ;;  %v268_v45 = vld [vmem:[#allocation2 + $0x10] sm:$0xff] }
  0x6d   : > { %v265_v36 = vld [vmem:[#allocation2 + $0x48] sm:$0xff]  ;;  %v267_v42 = vld [vmem:[#allocation2 + $0x20] sm:$0xff]  ;;  %v269_v48 = vld [vmem:[#allocation2 + $0x38] sm:$0xff] }
  0x6e   : > { %369 = vmatpush.bf16.msra.mxu0 %v942_v3  ;;  %947 = vmatpush.bf16.msra.mxu1 %v942_v3  ;;  %v270_v51 = vld [vmem:[#allocation2 + $0x60] sm:$0xff]  ;;  %v271_v54 = vld [vmem:[#allocation2 + $0x70] sm:$0xff]  ;;  %v272_v57 = vld [vmem:[#allocation2 + $0x78] sm:$0xff]  ;;  %p914_p8 = scmp.ne.s32.totalorder %s2124_s15, 1 }
  0x6f   : > { %948 = vmatpush.bf16.msra.mxu2 %v942_v3  ;;  %949 = vmatpush.bf16.msra.mxu3 %v942_v3  ;;  %v273_v60 = vld [vmem:[#allocation2 + $0x28] sm:$0xff]  ;;  %s2125_s29 = sld [smem:[#allocation15_spill]] (!%p914_p8) }
  0x70   : > { %s2126_s27 = sld [smem:[#allocation16_spill]] (!%p914_p8) }
  0x72   : > { %370 = vmatpush.bf16.msra.mxu0 %v941_v4  ;;  %950 = vmatpush.bf16.msra.mxu1 %v941_v4 }
  0x73   : > { %951 = vmatpush.bf16.msra.mxu2 %v941_v4  ;;  %952 = vmatpush.bf16.msra.mxu3 %v941_v4 }
  0x76   : > { %p915_p12 = scmp.eq.s32.totalorder (!%p914_p8), %s2126_s27, %s2125_s29 }
  0x79   : > { %305 = vxpose.xlu0.c.b16.cont [2/3] (short) %v939_v5, 128 }
  0x89   : > { %306 = vxpose.xlu0.c.b16.end [3/3] (short) %v940_v6, 128 }
 0x115   : > { %v312_v7 = vpop.trf.xlu0 }
 0x116   : > { %906 = vmatmul.msk.bf16.vlgmr.msra.gmra.mxu0 %vm338_vm0, %v312_v7 }
 0x125   : > { %v313_v8 = vpop.trf.xlu0 }
 0x126   : > { %907 = vmatmul.msk.bf16.gmra.mxu0 %vm338_vm0, %v313_v8 }
 0x135   : > { %v314_v9 = vpop.trf.xlu0 }
 0x136   : > { %908 = vmatmul.msk.bf16.vlgmr.msra.gmra.mxu1 %vm338_vm0, %v314_v9 }
 0x145   : > { %v315_v10 = vpop.trf.xlu0 }
 0x146   : > { %909 = vmatmul.msk.bf16.gmra.mxu1 %vm338_vm0, %v315_v10 }
 0x155   : > { %v316_v11 = vpop.trf.xlu0 }
 0x156   : > { %910 = vmatmul.msk.bf16.vlgmr.msra.gmra.mxu2 %vm338_vm0, %v316_v11 }
 0x165   : > { %v317_v12 = vpop.trf.xlu0 }
 0x166   : > { %911 = vmatmul.msk.bf16.gmra.mxu2 %vm338_vm0, %v317_v12 }
 0x175   : > { %v318_v13 = vpop.trf.xlu0 }
 0x176   : > { %912 = vmatmul.msk.bf16.vlgmr.msra.gmra.mxu3 %vm338_vm0, %v318_v13 }
 0x185   : > { %v319_v14 = vpop.trf.xlu0 }
 0x186   : > { %913 = vmatmul.msk.bf16.gmra.mxu3 %vm338_vm0, %v319_v14 }
 0x193   : > { %v372_v16 = vpop.f32.mrf.mxu0 }
 0x194   : > { %v412_v17 = vadd.f32 %v372_v16, %v258_v15 }
 0x196   : > { %428 = vst [vmem:[#allocation2 + $0x30] sm:$0xff] %v412_v17 }
 0x19b   : > { %v374_v19 = vpop.f32.mrf.mxu0 }
 0x19c   : > { %v413_v20 = vadd.f32 %v374_v19, %v259_v18 }
 0x19e   : > { %429 = vst [vmem:[#allocation2] sm:$0xff] %v413_v20 }
 0x1a3   : > { %v377_v22 = vpop.f32.mrf.mxu0 }
 0x1a4   : > { %v414_v23 = vadd.f32 %v377_v22, %v260_v21 }
 0x1a6   : > { %430 = vst [vmem:[#allocation2 + $0x58] sm:$0xff] %v414_v23 }
 0x1ab   : > { %v379_v25 = vpop.f32.mrf.mxu0 }
 0x1ac   : > { %v415_v26 = vadd.f32 %v379_v25, %v261_v24 }
 0x1ae   : > { %431 = vst [vmem:[#allocation2 + $0x18] sm:$0xff] %v415_v26 }
 0x1b3   : > { %v382_v28 = vpop.f32.mrf.mxu1 }
 0x1b4   : > { %v416_v29 = vadd.f32 %v382_v28, %v262_v27 }
 0x1b6   : > { %432 = vst [vmem:[#allocation2 + $0x50] sm:$0xff] %v416_v29 }
 0x1bb   : > { %v384_v31 = vpop.f32.mrf.mxu1 }
 0x1bc   : > { %v417_v32 = vadd.f32 %v384_v31, %v263_v30 }
 0x1be   : > { %433 = vst [vmem:[#allocation2 + $0x68] sm:$0xff] %v417_v32 }
 0x1c3   : > { %v387_v34 = vpop.f32.mrf.mxu1 }
 0x1c4   : > { %v418_v35 = vadd.f32 %v387_v34, %v264_v33 }
 0x1c6   : > { %434 = vst [vmem:[#allocation2 + $0x8] sm:$0xff] %v418_v35 }
 0x1cb   : > { %v389_v37 = vpop.f32.mrf.mxu1 }
 0x1cc   : > { %v419_v38 = vadd.f32 %v389_v37, %v265_v36 }
 0x1ce   : > { %435 = vst [vmem:[#allocation2 + $0x48] sm:$0xff] %v419_v38 }
 0x1d9   : > { %v392_v40 = vpop.f32.mrf.mxu2 }
 0x1da   : > { %v420_v41 = vadd.f32 %v392_v40, %v266_v39 }
 0x1dc   : > { %436 = vst [vmem:[#allocation2 + $0x40] sm:$0xff] %v420_v41 }
 0x1e1   : > { %v394_v43 = vpop.f32.mrf.mxu2 }
 0x1e2   : > { %v421_v44 = vadd.f32 %v394_v43, %v267_v42 }
 0x1e4   : > { %437 = vst [vmem:[#allocation2 + $0x20] sm:$0xff] %v421_v44 }
 0x1e9   : > { %v397_v46 = vpop.f32.mrf.mxu2 }
 0x1ea   : > { %v422_v47 = vadd.f32 %v397_v46, %v268_v45 }
 0x1ec   : > { %438 = vst [vmem:[#allocation2 + $0x10] sm:$0xff] %v422_v47 }
 0x1f1   : > { %v399_v49 = vpop.f32.mrf.mxu2 }
 0x1f2   : > { %v423_v50 = vadd.f32 %v399_v49, %v269_v48 }
 0x1f4   : > { %439 = vst [vmem:[#allocation2 + $0x38] sm:$0xff] %v423_v50 }
 0x1f9   : > { %v402_v52 = vpop.f32.mrf.mxu3 }
 0x1fa   : > { %v424_v53 = vadd.f32 %v402_v52, %v270_v51 }
 0x1fc   : > { %440 = vst [vmem:[#allocation2 + $0x60] sm:$0xff] %v424_v53 }
 0x201   : > { %v404_v55 = vpop.f32.mrf.mxu3 }
 0x202   : > { %v425_v56 = vadd.f32 %v404_v55, %v271_v54 }
 0x204   : > { %441 = vst [vmem:[#allocation2 + $0x70] sm:$0xff] %v425_v56 }
 0x209   : > { %v407_v58 = vpop.f32.mrf.mxu3 }
 0x20a   : > { %v426_v59 = vadd.f32 %v407_v58, %v272_v57 }
 0x20c   : > { %442 = vst [vmem:[#allocation2 + $0x78] sm:$0xff] %v426_v59 }
 0x210   : > { %447 = sbr.rel (%p914_p8) target bundleno = 1002 (0x3ea), region = 44 }
 0x211   : > { %v409_v61 = vpop.f32.mrf.mxu3 }
 0x212   : > { %v427_v62 = vadd.f32 %v409_v61, %v273_v60 }
 0x214   : > { %443 = vst [vmem:[#allocation2 + $0x28] sm:$0xff] %v427_v62 }
 0x215   : > { %v1607_v63 = vld [vmem:[#allocation2 + $0x30] sm:$0xff]  ;;  %v1609_v0 = vld [vmem:[#allocation2] sm:$0xff]  ;;  %v1611_v1 = vld [vmem:[#allocation2 + $0x58] sm:$0xff] }
 0x216   : > { %v1613_v2 = vld [vmem:[#allocation2 + $0x18] sm:$0xff]  ;;  %v464_v3 = vmul.f32 %v1607_v63, %v1607_v63  ;;  %v465_v4 = vmul.f32 %v1609_v0, %v1609_v0  ;;  %v466_v5 = vmul.f32 %v1611_v1, %v1611_v1  ;;  %v1621_v6 = vld [vmem:[#allocation2 + $0x50] sm:$0xff]  ;;  %v1625_v9 = vld [vmem:[#allocation2 + $0x68] sm:$0xff] }
 0x217   : > { %v467_v7 = vmul.f32 %v1613_v2, %v1613_v2  ;;  %v468_v10 = vmul.f32 %v1621_v6, %v1621_v6  ;;  %v454_v12 = vld [vmem:[#allocation2 + $0x8] sm:$0xff]  ;;  %v469_v13 = vmul.f32 %v1625_v9, %v1625_v9  ;;  %v456_v18 = vld [vmem:[#allocation2 + $0x40] sm:$0xff]  ;;  %v1631_v24 = vld [vmem:[#allocation2 + $0x10] sm:$0xff] }
 0x218   : > { %v480_v8 = vadd.f32 %v465_v4, %v464_v3  ;;  %v455_v15 = vld [vmem:[#allocation2 + $0x48] sm:$0xff]  ;;  %v470_v16 = vmul.f32 %v454_v12, %v454_v12  ;;  %v457_v21 = vld [vmem:[#allocation2 + $0x20] sm:$0xff]  ;;  %v472_v22 = vmul.f32 %v456_v18, %v456_v18  ;;  %v1633_v27 = vld [vmem:[#allocation2 + $0x38] sm:$0xff]  ;;  %v474_v28 = vmul.f32 %v1631_v24, %v1631_v24 }
 0x219   : > { %v471_v19 = vmul.f32 %v455_v15, %v455_v15  ;;  %v473_v25 = vmul.f32 %v457_v21, %v457_v21  ;;  %v1637_v30 = vld [vmem:[#allocation2 + $0x60] sm:$0xff]  ;;  %v475_v31 = vmul.f32 %v1633_v27, %v1633_v27  ;;  %v1641_v33 = vld [vmem:[#allocation2 + $0x70] sm:$0xff]  ;;  %v1645_v36 = vld [vmem:[#allocation2 + $0x78] sm:$0xff] }
 0x21a   : > { %v481_v11 = vadd.f32 %v480_v8, %v466_v5  ;;  %v476_v34 = vmul.f32 %v1637_v30, %v1637_v30  ;;  %v477_v37 = vmul.f32 %v1641_v33, %v1641_v33  ;;  %v478_v40 = vmul.f32 %v1645_v36, %v1645_v36 }
 0x21b   : > { %v1649_v39 = vld [vmem:[#allocation2 + $0x28] sm:$0xff] }
 0x21c   : > { %v482_v14 = vadd.f32 %v481_v11, %v467_v7  ;;  %v479_v42 = vmul.f32 %v1649_v39, %v1649_v39 }
 0x21e   : > { %v483_v17 = vadd.f32 %v482_v14, %v468_v10 }
 0x220   : > { %v484_v20 = vadd.f32 %v483_v17, %v469_v13 }
 0x222   : > { %v485_v23 = vadd.f32 %v484_v20, %v470_v16 }
 0x224   : > { %v486_v26 = vadd.f32 %v485_v23, %v471_v19 }
 0x226   : > { %v487_v29 = vadd.f32 %v486_v26, %v472_v22 }
 0x228   : > { %v488_v32 = vadd.f32 %v487_v29, %v473_v25 }
 0x22a   : > { %v489_v35 = vadd.f32 %v488_v32, %v474_v28 }
 0x22c   : > { %v490_v38 = vadd.f32 %v489_v35, %v475_v31 }
 0x22e   : > { %v491_v41 = vadd.f32 %v490_v38, %v476_v34 }
 0x230   : > { %v492_v43 = vadd.f32 %v491_v41, %v477_v37 }
 0x232   : > { %v493_v44 = vadd.f32 %v492_v43, %v478_v40 }
 0x234   : > { %v494_v45 = vadd.f32 %v493_v44, %v479_v42 }
 0x236   : > { %495 = vadd.xlane.f32.xlu0 %v494_v45 }
 0x2a9   : > { %v496_v46 = vpop.xlane.xlu0 %495 }
 0x2aa   : > { %v497_v47 = vrot.slane %v496_v46, 4 }
 0x2ac   : > { %v498_v48 = vadd.f32 %v497_v47, %v496_v46 }
 0x2ae   : > { %v499_v49 = vrot.slane %v498_v48, 2 }
 0x2b0   : > { %v500_v50 = vadd.f32 %v499_v49, %v498_v48 }
 0x2b2   : > { %v501_v51 = vrot.slane %v500_v50, 1 }
 0x2b4   : > { %v502_v52 = vadd.f32 %v501_v51, %v500_v50 }
 0x2b6   : > { %959 = vpush %v502_v52 }
 0x2e4   : > { %508 = sbr.rel (%p915_p12) target bundleno = 748 (0x2ec), region = 48 }
 0x2e7   : > { %s1655_s28 = spop %959 }
 0x2e8   : > { %s504_s20 = smul.f32 2.170139e-06, %s1655_s28 }
 0x2ea   : > { %v509_v53 = vstv %s504_s20 }
 0x2eb   : > { %510 = vst [vmem:[%s1589_s0] sm:$0xff] %v509_v53 }
 0x2ec PF: > { %s2127_s25 = sld [smem:[#allocation15_spill]] }
 0x2ed   : > { %s2128_s12 = sld [smem:[#allocation16_spill]] }
 0x2f3   : > { %p916_p6 = scmp.ne.s32.totalorder %s2128_s12, %s2127_s25 }
 0x2f4   : > { %s2129_s23 = sld [smem:[#allocation16_spill]] (!%p916_p6) }
 0x2f5   : > { %514 = sbr.rel (%p916_p6) target bundleno = 1002 (0x3ea), region = 52 }
 0x2fa   : > { %v515_v54 = vlaneseq  ;;  %s917_s19 = sshll.u32 %s2129_s23, 7  ;;  %v600_v56 = vmul.f32 0.010416667, %v1607_v63  ;;  %v601_v57 = vmul.f32 0.010416667, %v1609_v0 }
 0x2fb   : > { %v1671_v58 = vmul.f32 0.010416667, %v1611_v1  ;;  %v1676_v60 = vmul.f32 0.010416667, %v1613_v2  ;;  %v1679_v61 = vmul.f32 0.010416667, %v1621_v6  ;;  %v1681_v62 = vstv %s917_s19 }
 0x2fc   : > { %v1665_v55 = vshrl.u32 %v515_v54, 7  ;;  %v1673_v59 = vand.u32 127, %v515_v54  ;;  %v1684_v3 = vmul.f32 0.010416667, %v1625_v9  ;;  %v1686_v4 = vmul.f32 0.010416667, %v454_v12 }
 0x2fd   : > { %v1688_v63 = vmul.f32 0.010416667, %v455_v15  ;;  %v1696_v2 = vmul.f32 0.010416667, %v456_v18  ;;  %v1698_v5 = vmul.f32 0.010416667, %v457_v21 }
 0x2fe   : > { %v1691_v0 = vadd.s32 8, %v1665_v55  ;;  %v1694_v1 = vadd.s32 16, %v1665_v55  ;;  %v1701_v6 = vadd.s32 24, %v1665_v55  ;;  %v1704_v7 = vadd.s32 32, %v1665_v55 }
 0x2ff   : > { %v1707_v8 = vadd.s32 40, %v1665_v55  ;;  %v1710_v9 = vadd.s32 48, %v1665_v55  ;;  %v1713_v10 = vadd.s32 56, %v1665_v55  ;;  %v1716_v11 = vadd.s32 64, %v1665_v55 }
 0x300   : > { %v1719_v12 = vadd.s32 72, %v1665_v55  ;;  %v1722_v13 = vadd.s32 80, %v1665_v55  ;;  %v1725_v14 = vadd.s32 88, %v1665_v55  ;;  %v1728_v15 = vadd.s32 96, %v1665_v55 }
 0x301   : > { %v1731_v16 = vadd.s32 104, %v1665_v55  ;;  %v1734_v17 = vadd.s32 112, %v1665_v55  ;;  %v1737_v18 = vadd.s32 120, %v1665_v55  ;;  %vm534_vm1 = vcmp.eq.s32.totalorder %v1665_v55, %v1673_v59 }
 0x302   : > { %vm535_vm2 = vcmp.eq.s32.totalorder %v1691_v0, %v1673_v59  ;;  %v552_v19 = vadd.s32 %v1681_v62, %v1665_v55  ;;  %v553_v20 = vadd.s32 %v1681_v62, %v1691_v0  ;;  %v554_v21 = vadd.s32 %v1681_v62, %v1694_v1 }
 0x303   : > { %v1751_v22 = vadd.s32 %v1681_v62, %v1701_v6  ;;  %v918_v23 = vadd.f32 -1.0, %v600_v56  ;;  %vm536_vm3 = vcmp.eq.s32.totalorder %v1694_v1, %v1673_v59  ;;  %v1757_v25 = vadd.s32 %v1681_v62, %v1704_v7 }
 0x304   : > { %v919_v26 = vadd.f32 -1.0, %v601_v57  ;;  %v648_v28 = vmul.f32 0.02, %v600_v56  ;;  %v649_v29 = vmul.f32 0.02, %v601_v57  ;;  %v1761_v31 = vadd.s32 %v1681_v62, %v1707_v8 }
 0x305   : > { %v1765_v32 = vadd.s32 %v1681_v62, %v1710_v9  ;;  %v1769_v34 = vadd.s32 %v1681_v62, %v1713_v10  ;;  %v1773_v35 = vadd.s32 %v1681_v62, %v1716_v11  ;;  %vm537_vm4 = vcmp.eq.s32.totalorder %v1701_v6, %v1673_v59 }
 0x306   : > { %v1779_v37 = vadd.s32 %v1681_v62, %v1719_v12  ;;  %v1783_v38 = vadd.s32 %v1681_v62, %v1722_v13  ;;  %v920_v40 = vadd.f32 -1.0, %v1671_v58  ;;  %v650_v41 = vmul.f32 0.02, %v1671_v58 }
 0x307   : > { %v1789_v42 = vadd.s32 %v1681_v62, %v1725_v14  ;;  %v1793_v43 = vadd.s32 %v1681_v62, %v1728_v15  ;;  %v921_v44 = vadd.f32 -1.0, %v1676_v60  ;;  %v632_v45 = vmul.f32 %v918_v23, %v918_v23 }
 0x308   : > { %vm538_vm5 = vcmp.eq.s32.totalorder %v1704_v7, %v1673_v59  ;;  %v633_v46 = vmul.f32 %v919_v26, %v919_v26  ;;  %v651_v47 = vmul.f32 0.02, %v1676_v60  ;;  %v664_v48 = vmul.f32 %v648_v28, %v600_v56 }
 0x309   : > { %v665_v49 = vmul.f32 %v649_v29, %v601_v57  ;;  %v1801_v50 = vadd.s32 %v1681_v62, %v1731_v16  ;;  %v1805_v51 = vadd.s32 %v1681_v62, %v1734_v17  ;;  %vm568_vm6 = vcmp.lt.s32.totalorder %v552_v19, 320 }
 0x30a   : > { %vm569_vm7 = vcmp.lt.s32.totalorder %v553_v20, 320  ;;  %vm539_vm8 = vcmp.eq.s32.totalorder %v1707_v8, %v1673_v59  ;;  %v922_v52 = vadd.f32 -1.0, %v1679_v61  ;;  %v634_v53 = vmul.f32 %v920_v40, %v920_v40  ;;  %vm1819_vm12 = vmand %vm534_vm1, %vm568_vm6 }
 0x30b   : > { %v652_v54 = vmul.f32 0.02, %v1679_v61  ;;  %v666_v56 = vmul.f32 %v650_v41, %v1671_v58  ;;  %vm570_vm9 = vcmp.lt.s32.totalorder %v554_v21, 320  ;;  %vm571_vm10 = vcmp.lt.s32.totalorder %v1751_v22, 320  ;;  %vm1832_vm0 = vmand %vm535_vm2, %vm569_vm7 }
 0x30c   : > { %v923_v57 = vadd.f32 -1.0, %v1684_v3  ;;  %v635_v23 = vmul.f32 %v921_v44, %v921_v44  ;;  %vm540_vm11 = vcmp.eq.s32.totalorder %v1710_v9, %v1673_v59  ;;  %v653_v26 = vmul.f32 0.02, %v1684_v3  ;;  %vm1846_vm2 = vmand %vm536_vm3, %vm570_vm9 }
 0x30d   : > { %v667_v58 = vmul.f32 %v651_v47, %v1676_v60  ;;  %v680_v28 = vsub.f32 %v632_v45, %v664_v48  ;;  %v681_v29 = vsub.f32 %v633_v46, %v665_v49  ;;  %vm572_vm13 = vcmp.lt.s32.totalorder %v1757_v25, 320  ;;  %vm1865_vm9 = vmand %vm537_vm4, %vm571_vm10 }
 0x30e   : > { %vm573_vm14 = vcmp.lt.s32.totalorder %v1761_v31, 320  ;;  %vm574_vm15 = vcmp.lt.s32.totalorder %v1765_v32, 320  ;;  %v924_v40 = vadd.f32 -1.0, %v1686_v4  ;;  %vm541_vm1 = vcmp.eq.s32.totalorder %v1713_v10, %v1673_v59  ;;  %vm1883_vm4 = vmand %vm538_vm5, %vm572_vm13 }
 0x30f   : > { %v636_v60 = vmul.f32 %v922_v52, %v922_v52  ;;  %v654_v41 = vmul.f32 0.02, %v1686_v4  ;;  %v668_v44 = vmul.f32 %v652_v54, %v1679_v61  ;;  %v682_v45 = vsub.f32 %v634_v53, %v666_v56  ;;  %vm1901_vm5 = vmand %vm539_vm8, %vm573_vm14 }
 0x310   : > { %vm575_vm6 = vcmp.lt.s32.totalorder %v1769_v34, 320  ;;  %v925_v20 = vadd.f32 -1.0, %v1688_v63  ;;  %v637_v46 = vmul.f32 %v923_v57, %v923_v57  ;;  %v655_v47 = vmul.f32 0.02, %v1688_v63  ;;  %vm1916_vm8 = vmand %vm540_vm11, %vm574_vm15 }
 0x311   : > { %vm542_vm7 = vcmp.eq.s32.totalorder %v1716_v11, %v1673_v59  ;;  %v669_v61 = vmul.f32 %v653_v26, %v1684_v3  ;;  %v683_v48 = vsub.f32 %v635_v23, %v667_v58  ;;  %v696_v21 = vsel %vm1819_vm12, %v680_v28, 0.0  ;;  %vm1931_vm11 = vmand %vm541_vm1, %vm575_vm6 }
 0x312   : > { %v697_v1 = vsel %vm1832_vm0, %v681_v29, 0.0  ;;  %vm576_vm3 = vcmp.lt.s32.totalorder %v1773_v35, 320  ;;  %v610_v3 = vmul.f32 0.010416667, %v1631_v24  ;;  %v926_v52 = vadd.f32 -1.0, %v1696_v2 }
 0x313   : > { %v638_v53 = vmul.f32 %v924_v40, %v924_v40  ;;  %vm543_vm12 = vcmp.eq.s32.totalorder %v1719_v12, %v1673_v59  ;;  %vm577_vm0 = vcmp.lt.s32.totalorder %v1779_v37, 320  ;;  %v656_v54 = vmul.f32 0.02, %v1696_v2  ;;  %vm1943_vm15 = vmand %vm542_vm7, %vm576_vm3 }
 0x314   : > { %v670_v22 = vmul.f32 %v654_v41, %v1686_v4  ;;  %v684_v56 = vsub.f32 %v636_v60, %v668_v44  ;;  %v698_v6 = vsel %vm1846_vm2, %v682_v45, 0.0  ;;  %v611_v57 = vmul.f32 0.010416667, %v1633_v27  ;;  %vm1956_vm6 = vmand %vm543_vm12, %vm577_vm0 }
 0x315   : > { %v927_v23 = vadd.f32 -1.0, %v1698_v5  ;;  %v639_v19 = vmul.f32 %v925_v20, %v925_v20  ;;  %v712_v26 = vadd.f32 %v697_v1, %v696_v21  ;;  %vm544_vm10 = vcmp.eq.s32.totalorder %v1722_v13, %v1673_v59 }
 0x316   : > { %vm578_vm2 = vcmp.lt.s32.totalorder %v1783_v38, 320  ;;  %v657_v4 = vmul.f32 0.02, %v1698_v5  ;;  %v671_v25 = vmul.f32 %v655_v47, %v1688_v63  ;;  %v685_v7 = vsub.f32 %v637_v46, %v669_v61 }
 0x317   : > { %v699_v58 = vsel %vm1865_vm9, %v683_v48, 0.0  ;;  %v612_v28 = vmul.f32 0.010416667, %v1637_v30  ;;  %v928_v29 = vadd.f32 -1.0, %v610_v3  ;;  %v640_v55 = vmul.f32 %v926_v52, %v926_v52  ;;  %vm1968_vm3 = vmand %vm544_vm10, %vm578_vm2 }
 0x318   : > { %v713_v40 = vadd.f32 %v712_v26, %v698_v6  ;;  %vm545_vm13 = vcmp.eq.s32.totalorder %v1725_v14, %v1673_v59  ;;  %v658_v63 = vmul.f32 0.02, %v610_v3  ;;  %v672_v60 = vmul.f32 %v656_v54, %v1696_v2 }
 0x319   : > { %v686_v41 = vsub.f32 %v638_v53, %v670_v22  ;;  %v700_v31 = vsel %vm1883_vm4, %v684_v56, 0.0  ;;  %v613_v8 = vmul.f32 0.010416667, %v1641_v33  ;;  %v929_v44 = vadd.f32 -1.0, %v611_v57 }
 0x31a   : > { %v641_v45 = vmul.f32 %v927_v23, %v927_v23  ;;  %v714_v0 = vadd.f32 %v713_v40, %v699_v58  ;;  %vm546_vm14 = vcmp.eq.s32.totalorder %v1728_v15, %v1673_v59  ;;  %v659_v2 = vmul.f32 0.02, %v611_v57 }
 0x31b   : > { %v673_v20 = vmul.f32 %v657_v4, %v1698_v5  ;;  %v687_v46 = vsub.f32 %v639_v19, %v671_v25  ;;  %v701_v32 = vsel %vm1901_vm5, %v685_v7, 0.0  ;;  %v614_v9 = vmul.f32 0.010416667, %v1645_v36 }
 0x31c   : > { %v930_v47 = vadd.f32 -1.0, %v612_v28  ;;  %v642_v61 = vmul.f32 %v928_v29, %v928_v29  ;;  %v715_v48 = vadd.f32 %v714_v0, %v700_v31  ;;  %v660_v21 = vmul.f32 0.02, %v612_v28 }
 0x31d   : > { %v674_v5 = vmul.f32 %v658_v63, %v610_v3  ;;  %v688_v1 = vsub.f32 %v640_v55, %v672_v60  ;;  %v702_v49 = vsel %vm1916_vm8, %v686_v41, 0.0  ;;  %v615_v36 = vmul.f32 0.010416667, %v1649_v39 }
 0x31e   : > { %v931_v34 = vadd.f32 -1.0, %v613_v8  ;;  %v643_v52 = vmul.f32 %v929_v44, %v929_v44  ;;  %v716_v53 = vadd.f32 %v715_v48, %v701_v32  ;;  %v661_v54 = vmul.f32 0.02, %v613_v8 }
 0x31f   : > { %v675_v3 = vmul.f32 %v659_v2, %v611_v57  ;;  %v689_v22 = vsub.f32 %v641_v45, %v673_v20  ;;  %v703_v56 = vsel %vm1931_vm11, %v687_v46, 0.0  ;;  %vm579_vm1 = vcmp.lt.s32.totalorder %v1789_v42, 320 }
 0x320   : > { %v932_v39 = vadd.f32 -1.0, %v614_v9  ;;  %v644_v35 = vmul.f32 %v930_v47, %v930_v47  ;;  %v717_v6 = vadd.f32 %v716_v53, %v702_v49  ;;  %v662_v24 = vmul.f32 0.02, %v614_v9  ;;  %vm595_vm0 = vmand %vm545_vm13, %vm579_vm1 }
 0x321   : > { %v676_v57 = vmul.f32 %v660_v21, %v612_v28  ;;  %v690_v23 = vsub.f32 %v642_v61, %v674_v5  ;;  %v704_v19 = vsel %vm1943_vm15, %v688_v1, 0.0  ;;  %vm580_vm7 = vcmp.lt.s32.totalorder %v1793_v43, 320 }
 0x322   : > { %v933_v37 = vadd.f32 -1.0, %v615_v36  ;;  %v645_v26 = vmul.f32 %v931_v34, %v931_v34  ;;  %v718_v4 = vadd.f32 %v717_v6, %v703_v56  ;;  %v663_v25 = vmul.f32 0.02, %v615_v36  ;;  %vm596_vm2 = vmand %vm546_vm14, %vm580_vm7 }
 0x323   : > { %v677_v7 = vmul.f32 %v661_v54, %v613_v8  ;;  %v691_v58 = vsub.f32 %v643_v52, %v675_v3  ;;  %v705_v27 = vsel %vm1956_vm6, %v689_v22, 0.0  ;;  %vm547_vm9 = vcmp.eq.s32.totalorder %v1731_v16, %v1673_v59 }
 0x324   : > { %v567_v38 = vadd.s32 %v1681_v62, %v1737_v18  ;;  %vm581_vm12 = vcmp.lt.s32.totalorder %v1801_v50, 320  ;;  %v719_v13 = vadd.f32 %v718_v4, %v704_v19  ;;  %v646_v28 = vmul.f32 %v932_v39, %v932_v39 }
 0x325   : > { %v678_v29 = vmul.f32 %v662_v24, %v614_v9  ;;  %v692_v55 = vsub.f32 %v644_v35, %v676_v57  ;;  %v706_v40 = vsel %vm1968_vm3, %v690_v23, 0.0  ;;  %vm548_vm4 = vcmp.eq.s32.totalorder %v1734_v17, %v1673_v59  ;;  %vm597_vm5 = vmand %vm547_vm9, %vm581_vm12 }
 0x326   : > { %vm582_vm10 = vcmp.lt.s32.totalorder %v1805_v51, 320  ;;  %v720_v62 = vadd.f32 %v719_v13, %v705_v27  ;;  %v647_v14 = vmul.f32 %v933_v37, %v933_v37  ;;  %v679_v42 = vmul.f32 %v663_v25, %v615_v36 }
 0x327   : > { %v693_v63 = vsub.f32 %v645_v26, %v677_v7  ;;  %v707_v60 = vsel %vm595_vm0, %v691_v58, 0.0  ;;  %vm549_vm13 = vcmp.eq.s32.totalorder %v1737_v18, %v1673_v59  ;;  %vm583_vm8 = vcmp.lt.s32.totalorder %v567_v38, 320  ;;  %vm598_vm11 = vmand %vm548_vm4, %vm582_vm10 }
 0x328   : > { %v721_v17 = vadd.f32 %v720_v62, %v706_v40  ;;  %v694_v43 = vsub.f32 %v646_v28, %v678_v29  ;;  %v708_v51 = vsel %vm596_vm2, %v692_v55, 0.0  ;;  %v695_v41 = vsub.f32 %v647_v14, %v679_v42  ;;  %vm599_vm14 = vmand %vm549_vm13, %vm583_vm8 }
 0x329   : > { %v709_v31 = vsel %vm597_vm5, %v693_v63, 0.0 }
 0x32a   : > { %v722_v15 = vadd.f32 %v721_v17, %v707_v60  ;;  %v710_v8 = vsel %vm598_vm11, %v694_v43, 0.0  ;;  %v711_v44 = vsel %vm599_vm14, %v695_v41, 0.0 }
 0x32c   : > { %v723_v30 = vadd.f32 %v722_v15, %v708_v51 }
 0x32e   : > { %v724_v50 = vadd.f32 %v723_v30, %v709_v31 }
 0x330   : > { %v725_v16 = vadd.f32 %v724_v50, %v710_v8 }
 0x332   : > { %v726_v45 = vadd.f32 %v725_v16, %v711_v44 }
 0x334   : > { %727 = vadd.xlane.f32.xlu0 %v726_v45 }
 0x3a7   : > { %v728_v0 = vpop.xlane.xlu0 %727 }
 0x3a8   : > { %v729_v2 = vrot.slane %v728_v0, 4 }
 0x3aa   : > { %v730_v59 = vadd.f32 %v729_v2, %v728_v0 }
 0x3ac   : > { %v731_v18 = vrot.slane %v730_v59, 2 }
 0x3ae   : > { %v732_v20 = vadd.f32 %v731_v18, %v730_v59 }
 0x3b0   : > { %v733_v46 = vrot.slane %v732_v20, 1 }
 0x3b2   : > { %v734_v32 = vadd.f32 %v733_v46, %v732_v20 }
 0x3b4   : > { %961 = vpush %v734_v32 }
 0x3e5   : > { %s962_s30 = spop %961 }
 0x3e6   : > { %s736_s7 = sadd.f32 %s962_s30, %s504_s20 }
 0x3e8   : > { %v737_v33 = vstv %s736_s7 }
 0x3e9   : > { %738 = vst [vmem:[%s1589_s0] sm:$0xff] %v737_v33 }
 0x3ea PF: > { %s2152_s6 = sld [smem:[#allocation16_spill]]  ;;  %s754_s17 = sshll.u32 %s1589_s0, 4  ;;  %s755_s17 = int_to_ptr.vmem [resolvable:$true] %s754_s17 }
 0x3eb   : > { %s2153_s3 = sld [smem:[#allocation15_spill]]  ;;  %s740_s20 = scalar_lea.sflag [#allocation5], %s232_s26 }
 0x3ec   : > { %s2154_s27 = sld [smem:[#allocation24_spill]] }
 0x3f0   : > { %s963_s14 = smul.u32 3, %s2152_s6 }
 0x3f2   : > { %s750_s2 = sadd.s32 %s2153_s3, %s963_s14  ;;  %s1198_s30 = scalar_lea.hbm %s2154_s27, 72 }
 0x3f3   : > { %s935_s4 = sshll.u32 %s750_s2, 3 }
 0x3f4   : > { %s752_s25 = scalar_lea.hbm %s2154_s27, %s935_s4 }
 0x3f5   : > { %s756_s28 = sshll.u32 %s752_s25, 4  ;;  %s757_s28 = int_to_ptr.hbm [resolvable:$true] %s756_s28 }
 0x3f6   : > { %s1192_s12 = sshra.s32 %s757_s28, 4  ;;  %s1193_s12 = int_to_ptr.hbm [resolvable:$true] %s1192_s12 }
 0x3f7   : > { %s1194_s23 = scalar_lea.hbm %s1193_s12, 8  ;;  %p1199_p11 = scmp.lt.s32.totalorder %s1193_s12, %s2154_s27 }
 0x3f8   : > { %p1195_p0 = scmp.ne.s32.totalorder %s1193_s12, %s1194_s23  ;;  %p1200_p13 = scmp.lt.s32.totalorder %s1198_s30, %s1194_s23 }
 0x3fa   : > { %p1196_p9 = pnand %p1195_p0, %p1538_p4  ;;  %p1201_p1 = por %p1200_p13, %p1199_p11 }
 0x3fc   : > { %p1197_p10 = pneg %p1196_p9 }
 0x3fe   : > { %p1202_p3 = pnand %p1201_p1, %p1197_p10 }
 0x400   : > { %1205 = shalt.err (!%p1202_p3)
}
 0x401   : > { %968 = dma.vmem_to_hbm [thread:$0]  (%p1538_p4), %s755_s17, 128, %s757_s28, %s740_s20  }
 0x402 PF: > { %p984_p5 = scmp.ge.s32.totalorder %s1344_s24, 2  ;;  %s768_s26 = sand.u32 1, %s1284_s9  }
 0x403   : > { %s769_s3 = scalar_lea.sflag [#allocation5], %s768_s26 }
 0x404   : > { %p978_p7 = pnand %p984_p5, %p1552_p2 }
 0x406   : > { %p979_p8 = pneg %p978_p7 }
 0x408   : > { %1279 = dma.done.wait (%p979_p8), %s769_s3, 128  }
 0x409   : > { %1281 = vsyncadd (%p979_p8), %s769_s3, 4294967168  ;;  %s21_s24 = sadd.s32 1, %s1344_s24   ;;  %s2156_s8 = sld [smem:[#allocation12_spill]] }
 0x40a   : > { %p2027_p12 = scmp.ge.s32.totalorder %s21_s24, 20   ;;  %s2157_s17 = sld [smem:[#allocation21_spill]] }
 0x40b   : > { %s2158_s2 = sld [smem:[#allocation13_spill]]  ;;  %s2164_s9 = smov %s1288_s10 }
 0x40c   : > { %s2159_s5 = sld [smem:[#allocation22_spill]]  ;;  %s2166_s10 = smov %s1292_s11 }
 0x40d   : > { %s2160_s20 = sld [smem:[#allocation17_spill]]  ;;  %s2167_s11 = smov %s1550_s18 }
 0x40e   : > { %s2161_s4 = sld [smem:[#allocation18_spill]]  ;;  %s2168_s12 = smov %s1300_s13 }
 0x40f   : > { %s2162_s29 = sld [smem:[#allocation19_spill]]  ;;  %s2169_s13 = smov %s2156_s8 }
 0x410   : > { %s2163_s23 = sld [smem:[#allocation20_spill]]  ;;  %s2170_s14 = smov %s2157_s17 }
 0x411   : > { %s2171_s15 = smov %s1312_s16  ;;  %s2172_s16 = smov %s2158_s2 }
 0x412   : > { %s2173_s17 = smov %s2159_s5  ;;  %s2174_s18 = smov %s1332_s21 }
 0x413   : > { %s2175_s19 = smov %s1336_s22  ;;  %20 = sbr.rel (!%p2027_p12) target bundleno = 16 (0x10), region = 102 }
 0x414   : > { %s2176_s21 = smov %s2161_s4 }
 0x415   : > { %s2177_s22 = smov %s2162_s29 }
 0x418   :  { %775 = vsyncpa [#allocation4], 1 }
 0x419   :  { %777 = vsyncpa [#allocation4 + $0x1], 1 }
 0x41a   :  { %778 = vsyncpa [#allocation7], 1 }
 0x41b   :  { %780 = vsyncpa [#allocation7 + $0x1], 1 }
 0x41c   :  { %781 = vsyncpa [#allocation5], 1 }
 0x41d   :  { %783 = vsyncpa [#allocation5 + $0x1], 1 }

</bundles_post_ra>
